<compile_context>
chip_gen: v5e
topology: v5e:2x2
jax: 0.10.0
libtpu: 0.0.40
codegen_flags: <defaults>
</compile_context>

<pallas_src>
import functools

import jax
import jax.numpy as jnp
from jax.experimental import pallas as pl
from jax.experimental.pallas import tpu as pltpu

EPS = 1e-6


def _pick_tl(L, out_row_lanes):
    """Pick the L-tile: divides L (multiple of 8, or == L), keeps the per-step VMEM
    working set under ~16 MiB, and prefers >= ~1 MiB output tiles for the DMA."""
    lane = 128
    out_row_bytes = out_row_lanes * 4

    def working_set(t):
        # 2x double-buffered output tile
        # + double-buffered key tile (2 lanes padded to 128)
        # + ~8 lane-dense f32 intermediates ([t, 128] each) live per query group.
        return 2 * t * out_row_bytes + 2 * t * lane * 4 + 8 * t * lane * 4

    target = 1 << 20     # ~1 MiB output tile -> near HBM roofline
    budget = 16 << 20    # fits v5e 16 MiB scoped default & v7x 64 MiB / 2-TC part
    cands = [t for t in range(8, L + 1, 8) if L % t == 0] or [L]
    ok = [t for t in cands if working_set(t) <= budget] or [min(cands)]
    preferred = [t for t in ok if t * out_row_bytes >= target]
    return min(preferred) if preferred else max(ok)


def _prep_weights(w1, b1, w2, b2, Qg, D):
    """Fold layer-1 and build block-structured per-group weights.

    Layer 1 fold: feats=[rx, ry, ib, 1-ib] @ w1 + b1
                == rx*w1[0] + ry*w1[1] + ib*(w1[2]-w1[3]) + (w1[3]+b1)
    Returned:
      w1g [3*Qg, Qg*D]  rows 0..Qg-1 -> rx channel, Qg..2Qg-1 -> ry, 2Qg..3Qg-1 -> ib,
                        block (q, q*D:(q+1)*D) holds the per-channel weight vector.
      c1g [1, Qg*D]     (w1[3]+b1) tiled per query slot.
      w2g [Qg*D, Qg*D]  block-diagonal second Linear weight.
      b2g [1, Qg*D]     b2 tiled per query slot.
    """
    wx, wy = w1[0], w1[1]
    wd = w1[2] - w1[3]
    c1 = w1[3] + b1[0]
    eye = jnp.eye(Qg, dtype=w1.dtype)

    def blk(v):  # [D] -> [Qg, Qg*D] block-structured rows
        return (eye[:, :, None] * v[None, None, :]).reshape(Qg, Qg * D)

    w1g = jnp.concatenate([blk(wx), blk(wy), blk(wd)], axis=0)              # [3Qg, Qg*D]
    c1g = jnp.tile(c1, Qg)[None, :]                                         # [1, Qg*D]
    w2g = (eye[:, None, :, None] * w2[None, :, None, :]).reshape(Qg * D, Qg * D)
    b2g = jnp.tile(b2[0], Qg)[None, :]                                      # [1, Qg*D]
    return w1g, c1g, w2g, b2g


def _box2d_kernel(key_ref, qp_ref, w1g_ref, c1g_ref, w2g_ref, b2g_ref, out_ref,
                  *, q_group):
    # key_ref: [1, TL, 2]       key points (x, y)
    # qp_ref:  [1, 4, Qp]       rows: center_x, center_y, 1/(clamp(sx)+eps), 1/(clamp(sy)+eps)
    # w1g_ref: [3*Qg, Qg*D]     block-structured folded layer-1 weights
    # c1g_ref: [1, Qg*D]        folded layer-1 bias, tiled per query slot
    # w2g_ref: [Qg*D, Qg*D]     block-diagonal layer-2 weights
    # b2g_ref: [1, Qg*D]        layer-2 bias, tiled per query slot
    # out_ref: [1, TL, Qp*D]    lane-dense output slab
    Qp = qp_ref.shape[2]
    GD = w2g_ref.shape[0]          # q_group * D lanes per group
    G = Qp // q_group

    key = key_ref[0]               # [TL, 2]
    kx = key[:, 0:1]               # [TL, 1]
    ky = key[:, 1:2]

    qp = qp_ref[0]                 # [4, Qp]
    w1g = w1g_ref[...]
    c1g = c1g_ref[...]
    w2g = w2g_ref[...]
    b2g = b2g_ref[...]

    for g in range(G):             # static unroll; G is small
        lo, hi = g * q_group, (g + 1) * q_group
        qcx = qp[0:1, lo:hi]       # [1, Qg]
        qcy = qp[1:2, lo:hi]
        isx = qp[2:3, lo:hi]       # precomputed reciprocal of (clamped size + eps)
        isy = qp[3:4, lo:hi]

        rx = (kx - qcx) * isx      # [TL, Qg] normalized relative position
        ry = (ky - qcy) * isy
        in_box = jnp.logical_and(jnp.abs(rx) <= 0.5,
                                 jnp.abs(ry) <= 0.5).astype(jnp.float32)

        # Lane-dense feature tile -> MXU matmuls landing in output layout.
        feats = jnp.concatenate([rx, ry, in_box], axis=1)            # [TL, 3*Qg]
        h = jnp.maximum(
            jnp.dot(feats, w1g, preferred_element_type=jnp.float32) + c1g, 0.0)
        outg = jnp.dot(h, w2g, preferred_element_type=jnp.float32) + b2g

        # Store offset/width are multiples of Qg*D (= 128 lanes for D=16):
        # unmasked full-vreg vst; with G == 1 this is the single full-block write.
        out_ref[0, :, g * GD:(g + 1) * GD] = outg.astype(out_ref.dtype)


@functools.partial(jax.jit, static_argnames=("out_dim",))
def box2d_dist_fun(key_pos, query_center, query_size, params, *, out_dim):
    """key_pos [B,L,2], query_center [B,Q,2], query_size [B,Q,2] -> [B,L,Q,out_dim]."""
    B, L, _ = key_pos.shape
    _, Q, _ = query_center.shape
    D = out_dim
    w1, b1, w2, b2 = params   # [4,D], [1,D], [D,D], [1,D]

    # Query group: Qg*D lanes per MXU matmul / per store. 128 lanes (for D=16)
    # fills v5e's MXU exactly and keeps every store 128-aligned & unmasked on
    # all generations; the block-diag W2 stays a 64 KiB constant.
    Qg = max(1, min(Q, 128 // D)) if D <= 128 else 1
    G = -(-Q // Qg)            # ceil
    Qp = G * Qg                # padded query count (padding sliced off below)

    w1g, c1g, w2g, b2g = _prep_weights(w1, b1, w2, b2, Qg, D)

    # Pack per-query scalars (with reciprocals) into one block: one DMA per step.
    inv_size = 1.0 / (jnp.maximum(query_size, EPS) + EPS)                   # [B,Q,2]
    qpack = jnp.stack([query_center[..., 0], query_center[..., 1],
                       inv_size[..., 0], inv_size[..., 1]], axis=1)         # [B,4,Q]
    if Qp > Q:
        qpack = jnp.pad(qpack, ((0, 0), (0, 0), (0, Qp - Q)),
                        constant_values=1.0)   # finite dummies; output discarded

    TL = _pick_tl(L, Qp * D)
    grid = (B, L // TL)

    key_spec = pl.BlockSpec((1, TL, 2), lambda b, l: (b, l, 0))
    qp_spec = pl.BlockSpec((1, 4, Qp), lambda b, l: (b, 0, 0))
    w1g_spec = pl.BlockSpec(w1g.shape, lambda b, l: (0, 0))
    c1g_spec = pl.BlockSpec(c1g.shape, lambda b, l: (0, 0))
    w2g_spec = pl.BlockSpec(w2g.shape, lambda b, l: (0, 0))
    b2g_spec = pl.BlockSpec(b2g.shape, lambda b, l: (0, 0))
    out_spec = pl.BlockSpec((1, TL, Qp * D), lambda b, l: (b, l, 0))

    out = pl.pallas_call(
        functools.partial(_box2d_kernel, q_group=Qg),
        out_shape=jax.ShapeDtypeStruct((B, L, Qp * D), jnp.float32),
        grid_spec=pltpu.PrefetchScalarGridSpec(
            num_scalar_prefetch=0,
            grid=grid,
            in_specs=[key_spec, qp_spec, w1g_spec, c1g_spec, w2g_spec, b2g_spec],
            out_specs=out_spec,
        ),
        compiler_params=pltpu.CompilerParams(
            dimension_semantics=("parallel", "parallel"),
            vmem_limit_bytes=32 * 1024 * 1024),
    )(key_pos, qpack, w1g, c1g, w2g, b2g)

    # Row-major contiguous -> free reshape back to the reference layout.
    out = out.reshape(B, L, Qp, D)
    if Qp > Q:
        out = out[:, :, :Q, :]
    return out


def init_params(key, out_dim):
    """Deterministic init of MLP(4, out_dim, out_dim, 2) parameters."""
    k1, k2, k3, k4 = jax.random.split(key, 4)
    w1 = jax.random.normal(k1, (4, out_dim), jnp.float32) * 0.1
    b1 = jax.random.normal(k2, (1, out_dim), jnp.float32) * 0.1
    w2 = jax.random.normal(k3, (out_dim, out_dim), jnp.float32) * 0.1
    b2 = jax.random.normal(k4, (1, out_dim), jnp.float32) * 0.1
    return (w1, b1, w2, b2)


def reference(key_pos, query_center, query_size, params):
    """Pure-JAX reference mirroring the PyTorch forward."""
    w1, b1, w2, b2 = params
    rel = key_pos[:, :, None, :] - query_center[:, None, :, :]
    qs = jnp.maximum(query_size, EPS)
    rel_norm = rel / (qs[:, None, :, :] + EPS)
    in_box = jnp.all(jnp.abs(rel_norm) <= 0.5, axis=-1, keepdims=True)
    in_box = in_box.astype(jnp.float32)
    feats = jnp.concatenate([rel_norm, in_box, 1.0 - in_box], axis=-1)
    h = jnp.maximum(feats @ w1 + b1[0], 0.0)
    return h @ w2 + b2[0]


if __name__ == "__main__":
    B, L, Q, OUT_DIM = 2, 16, 8, 16

    root = jax.random.PRNGKey(0)
    k_pos, k_center, k_size, k_params = jax.random.split(root, 4)

    key_pos = jax.random.uniform(k_pos, (B, L, 2), jnp.float32)          # [B, L, 2]
    query_center = jax.random.uniform(k_center, (B, Q, 2), jnp.float32)  # [B, Q, 2]
    query_size = jax.random.uniform(k_size, (B, Q, 2), jnp.float32,
                                    minval=0.1, maxval=0.5)              # [B, Q, 2]
    params = init_params(k_params, OUT_DIM)

    out = box2d_dist_fun(key_pos, query_center, query_size, params, out_dim=OUT_DIM)
    out = jax.block_until_ready(out)

    ref = reference(key_pos, query_center, query_size, params)
    assert out.shape == (B, L, Q, OUT_DIM), out.shape
    assert jnp.allclose(out, ref, rtol=1e-5, atol=1e-5), \
        float(jnp.max(jnp.abs(out - ref)))

    print("KERNEL_OK")
</pallas_src>

<mosaic_0001>
module attributes {stable_mosaic.version = 11 : i64} {
  func.func @_box2d_kernel(%arg0: i32, %arg1: i32, %arg2: memref<1x16x2xf32, #tpu.memory_space<vmem>>, %arg3: memref<1x4x8xf32, #tpu.memory_space<vmem>>, %arg4: memref<24x128xf32, #tpu.memory_space<vmem>>, %arg5: memref<1x128xf32, #tpu.memory_space<vmem>>, %arg6: memref<128x128xf32, #tpu.memory_space<vmem>>, %arg7: memref<1x128xf32, #tpu.memory_space<vmem>>, %arg8: memref<1x16x128xf32, #tpu.memory_space<vmem>>) attributes {dimension_semantics = [#tpu.dimension_semantics<parallel>, #tpu.dimension_semantics<parallel>], iteration_bounds = array<i64: 2, 1>, scalar_prefetch = 0 : i64, scratch_operands = 0 : i64, tpu.core_type = #tpu.core_type<tc>, window_params = [{transform_indices = @transform_0, window_bounds = array<i64: 1, 16, 2>}, {transform_indices = @transform_1, window_bounds = array<i64: 1, 4, 8>}, {pipeline_mode = #tpu.pipeline_mode<synchronous>, transform_indices = @transform_2, window_bounds = array<i64: 24, 128>}, {pipeline_mode = #tpu.pipeline_mode<synchronous>, transform_indices = @transform_3, window_bounds = array<i64: 1, 128>}, {pipeline_mode = #tpu.pipeline_mode<synchronous>, transform_indices = @transform_4, window_bounds = array<i64: 128, 128>}, {pipeline_mode = #tpu.pipeline_mode<synchronous>, transform_indices = @transform_5, window_bounds = array<i64: 1, 128>}, {transform_indices = @transform_6, window_bounds = array<i64: 1, 16, 128>}]} {
    %c0 = arith.constant 0 : index
    %c0_0 = arith.constant 0 : index
    %c0_1 = arith.constant 0 : index
    %0 = vector.load %arg2[%c0, %c0_0, %c0_1] : memref<1x16x2xf32, #tpu.memory_space<vmem>>, vector<1x16x2xf32>
    %1 = vector.shape_cast %0 : vector<1x16x2xf32> to vector<16x2xf32>
    %2 = vector.extract_strided_slice %1 {offsets = [0, 0], sizes = [16, 1], strides = [1, 1]} : vector<16x2xf32> to vector<16x1xf32>
    %3 = vector.extract_strided_slice %1 {offsets = [0, 1], sizes = [16, 1], strides = [1, 1]} : vector<16x2xf32> to vector<16x1xf32>
    %c0_2 = arith.constant 0 : index
    %c0_3 = arith.constant 0 : index
    %c0_4 = arith.constant 0 : index
    %4 = vector.load %arg3[%c0_2, %c0_3, %c0_4] : memref<1x4x8xf32, #tpu.memory_space<vmem>>, vector<1x4x8xf32>
    %5 = vector.shape_cast %4 : vector<1x4x8xf32> to vector<4x8xf32>
    %c0_5 = arith.constant 0 : index
    %c0_6 = arith.constant 0 : index
    %6 = vector.load %arg4[%c0_5, %c0_6] : memref<24x128xf32, #tpu.memory_space<vmem>>, vector<24x128xf32>
    %c0_7 = arith.constant 0 : index
    %c0_8 = arith.constant 0 : index
    %7 = vector.load %arg5[%c0_7, %c0_8] : memref<1x128xf32, #tpu.memory_space<vmem>>, vector<1x128xf32>
    %c0_9 = arith.constant 0 : index
    %c0_10 = arith.constant 0 : index
    %8 = vector.load %arg6[%c0_9, %c0_10] : memref<128x128xf32, #tpu.memory_space<vmem>>, vector<128x128xf32>
    %c0_11 = arith.constant 0 : index
    %c0_12 = arith.constant 0 : index
    %9 = vector.load %arg7[%c0_11, %c0_12] : memref<1x128xf32, #tpu.memory_space<vmem>>, vector<1x128xf32>
    %10 = vector.extract_strided_slice %5 {offsets = [0, 0], sizes = [1, 8], strides = [1, 1]} : vector<4x8xf32> to vector<1x8xf32>
    %11 = vector.extract_strided_slice %5 {offsets = [1, 0], sizes = [1, 8], strides = [1, 1]} : vector<4x8xf32> to vector<1x8xf32>
    %12 = vector.extract_strided_slice %5 {offsets = [2, 0], sizes = [1, 8], strides = [1, 1]} : vector<4x8xf32> to vector<1x8xf32>
    %13 = vector.extract_strided_slice %5 {offsets = [3, 0], sizes = [1, 8], strides = [1, 1]} : vector<4x8xf32> to vector<1x8xf32>
    %14 = vector.broadcast %2 : vector<16x1xf32> to vector<16x8xf32>
    %15 = vector.broadcast %10 : vector<1x8xf32> to vector<16x8xf32>
    %16 = arith.subf %14, %15 : vector<16x8xf32>
    %17 = vector.broadcast %12 : vector<1x8xf32> to vector<16x8xf32>
    %18 = arith.mulf %16, %17 : vector<16x8xf32>
    %19 = vector.broadcast %3 : vector<16x1xf32> to vector<16x8xf32>
    %20 = vector.broadcast %11 : vector<1x8xf32> to vector<16x8xf32>
    %21 = arith.subf %19, %20 : vector<16x8xf32>
    %22 = vector.broadcast %13 : vector<1x8xf32> to vector<16x8xf32>
    %23 = arith.mulf %21, %22 : vector<16x8xf32>
    %24 = math.absf %18 : vector<16x8xf32>
    %cst = arith.constant 5.000000e-01 : f32
    %25 = vector.broadcast %cst : f32 to vector<16x8xf32>
    %26 = arith.cmpf ole, %24, %25 : vector<16x8xf32>
    %27 = math.absf %23 : vector<16x8xf32>
    %cst_13 = arith.constant 5.000000e-01 : f32
    %28 = vector.broadcast %cst_13 : f32 to vector<16x8xf32>
    %29 = arith.cmpf ole, %27, %28 : vector<16x8xf32>
    %30 = arith.andi %26, %29 : vector<16x8xi1>
    %31 = arith.extui %30 : vector<16x8xi1> to vector<16x8xi32>
    %32 = arith.sitofp %31 : vector<16x8xi32> to vector<16x8xf32>
    %33 = tpu.concatenate %18, %23, %32 in 1 : vector<16x8xf32>, vector<16x8xf32>, vector<16x8xf32> -> vector<16x24xf32>
    %cst_14 = arith.constant dense<0.000000e+00> : vector<16x128xf32>
    %34 = tpu.matmul %33, %6, %cst_14 {dimension_numbers = #tpu.dot_dimension_numbers<[1], [0], [0], [1], [0, 0, 1, 1], [], []>} : vector<16x24xf32>, vector<24x128xf32>, vector<16x128xf32> -> vector<16x128xf32>
    %35 = vector.broadcast %7 : vector<1x128xf32> to vector<16x128xf32>
    %36 = arith.addf %34, %35 : vector<16x128xf32>
    %cst_15 = arith.constant 0.000000e+00 : f32
    %37 = vector.broadcast %cst_15 : f32 to vector<16x128xf32>
    %38 = arith.maximumf %36, %37 : vector<16x128xf32>
    %cst_16 = arith.constant dense<0.000000e+00> : vector<16x128xf32>
    %39 = tpu.matmul %38, %8, %cst_16 {dimension_numbers = #tpu.dot_dimension_numbers<[1], [0], [0], [1], [0, 0, 1, 1], [], []>} : vector<16x128xf32>, vector<128x128xf32>, vector<16x128xf32> -> vector<16x128xf32>
    %40 = vector.broadcast %9 : vector<1x128xf32> to vector<16x128xf32>
    %41 = arith.addf %39, %40 : vector<16x128xf32>
    %c0_17 = arith.constant 0 : index
    %c0_18 = arith.constant 0 : index
    %c0_19 = arith.constant 0 : index
    %42 = vector.load %arg8[%c0_17, %c0_18, %c0_19] : memref<1x16x128xf32, #tpu.memory_space<vmem>>, vector<1x16x128xf32>
    %43 = vector.shape_cast %42 : vector<1x16x128xf32> to vector<16x128xf32>
    %44 = vector.shape_cast %41 : vector<16x128xf32> to vector<1x16x128xf32>
    tpu.vector_store %arg8[%c0_17, %c0_18, %c0_19], %44 {strides = array<i32>} : memref<1x16x128xf32, #tpu.memory_space<vmem>>, vector<1x16x128xf32>,
    return
  }
  func.func @transform_0(%arg0: i32, %arg1: i32) -> (i32, i32, i32) {
    %c0_i32 = arith.constant 0 : i32
    %c0_i32_0 = arith.constant 0 : i32
    return %arg0, %arg1, %c0_i32 : i32, i32, i32
  }
  func.func @transform_1(%arg0: i32, %arg1: i32) -> (i32, i32, i32) {
    %c0_i32 = arith.constant 0 : i32
    %c0_i32_0 = arith.constant 0 : i32
    %c0_i32_1 = arith.constant 0 : i32
    return %arg0, %c0_i32, %c0_i32_0 : i32, i32, i32
  }
  func.func @transform_2(%arg0: i32, %arg1: i32) -> (i32, i32) {
    %c0_i32 = arith.constant 0 : i32
    %c0_i32_0 = arith.constant 0 : i32
    %c0_i32_1 = arith.constant 0 : i32
    return %c0_i32, %c0_i32_0 : i32, i32
  }
  func.func @transform_3(%arg0: i32, %arg1: i32) -> (i32, i32) {
    %c0_i32 = arith.constant 0 : i32
    %c0_i32_0 = arith.constant 0 : i32
    %c0_i32_1 = arith.constant 0 : i32
    return %c0_i32, %c0_i32_0 : i32, i32
  }
  func.func @transform_4(%arg0: i32, %arg1: i32) -> (i32, i32) {
    %c0_i32 = arith.constant 0 : i32
    %c0_i32_0 = arith.constant 0 : i32
    %c0_i32_1 = arith.constant 0 : i32
    return %c0_i32, %c0_i32_0 : i32, i32
  }
  func.func @transform_5(%arg0: i32, %arg1: i32) -> (i32, i32) {
    %c0_i32 = arith.constant 0 : i32
    %c0_i32_0 = arith.constant 0 : i32
    %c0_i32_1 = arith.constant 0 : i32
    return %c0_i32, %c0_i32_0 : i32, i32
  }
  func.func @transform_6(%arg0: i32, %arg1: i32) -> (i32, i32, i32) {
    %c0_i32 = arith.constant 0 : i32
    %c0_i32_0 = arith.constant 0 : i32
    return %arg0, %arg1, %c0_i32 : i32, i32, i32
  }
}

</mosaic_0001>

<bundles_post_ra>
// kernel: tile.13
= control target key start
LH: loop header
LB: loop body
LE: loop exit
PB: predicated region body
PF: predicated region fallthrough
CT: control target
= control target key end

     0   :  { %s67_s10 = smov 112   ;;  %s68_s11 = smov 80   ;;  %vm3_vm0 = vcmask 130048   ;;  %vm9_vm1 = vcmask 1048448   ;;  %vm15_vm2 = vcmask 917248   ;;  %vm21_vm3 = vcmask 786048   ;;  %s111_s0 = inlined_call_operand.vmem [shape: f32[8,16], index: 0, kind: input, shape index: {}]   ;;  %s112_s1 = inlined_call_operand.vmem [shape: f32[1,128], index: 1, kind: output, shape index: {}]  }
   0x1   :  { %v53_v0 = vld [vmem:[%s111_s0 + $0x7] sm:$0x1]   ;;  %v55_v1 = vld [vmem:[%s111_s0 + $0x5] sm:$0x1]   ;;  %v57_v2 = vld [vmem:[%s111_s0 + $0x3] sm:$0x1]  }
   0x2   :  { %7 = vrot.lane.b32.xlu0 %v53_v0, %s67_s10  ;;  %19 = vrot.lane.b32.xlu1 %v55_v1, %s68_s11  ;;  %s69_s14 = smov 48   ;;  %v54_v3 = vld [vmem:[%s111_s0 + $0x6] sm:$0x1]   ;;  %v56_v4 = vld [vmem:[%s111_s0 + $0x4] sm:$0x1]   ;;  %s70_s21 = smov 96  }
   0x3   :  { %31 = vrot.lane.b32.xlu2 %v57_v2, %s69_s14  ;;  %v58_v5 = vld [vmem:[%s111_s0 + $0x2] sm:$0x1]   ;;  %s71_s22 = smov 64   ;;  %s72_s23 = smov 32   ;;  %v59_v6 = vld [vmem:[%s111_s0 + $0x1] sm:$0x1]  }
   0x4   :  { %s73_s26 = smov 16   ;;  %v2_v7 = vld [vmem:[%s111_s0] sm:$0x1]   ;;  %vm27_vm4 = vcmask 654848   ;;  %vm33_vm5 = vcmask 523648   ;;  %vm39_vm6 = vcmask 392448  }
   0x5   :  { %4 = vst.msk [vmem:[#allocation0] sm:$0x1] %vm3_vm0, %v2_v7   ;;  %vm45_vm7 = vcmask 261248  }
   0xa   :  { %13 = vrot.lane.b32.xlu0 %v54_v3, %s70_s21  ;;  %25 = vrot.lane.b32.xlu1 %v56_v4, %s71_s22 }
   0xb   :  { %37 = vrot.lane.b32.xlu2 %v58_v5, %s72_s23 }
  0x12   :  { %43 = vrot.lane.b32.xlu0 %v59_v6, %s73_s26 }
  0x5d   :  { %v32_v8 = vpop.permute.xlu2 %31  }
  0x65   :  { %v38_v9 = vpop.permute.xlu2 %37  }
  0x74   :  { %v8_v10 = vpop.permute.xlu0 %7   ;;  %v20_v11 = vpop.permute.xlu1 %19  }
  0x75   :  { %10 = vst.msk [vmem:[#allocation0] sm:$0x1] %vm9_vm1, %v8_v10  }
  0x7c   :  { %v14_v12 = vpop.permute.xlu0 %13   ;;  %v26_v13 = vpop.permute.xlu1 %25  }
  0x7d   :  { %16 = vst.msk [vmem:[#allocation0] sm:$0x1] %vm15_vm2, %v14_v12  }
  0x7e   :  { %22 = vst.msk [vmem:[#allocation0] sm:$0x1] %vm21_vm3, %v20_v11  }
  0x7f   :  { %28 = vst.msk [vmem:[#allocation0] sm:$0x1] %vm27_vm4, %v26_v13  }
  0x80   :  { %34 = vst.msk [vmem:[#allocation0] sm:$0x1] %vm33_vm5, %v32_v8  }
  0x81   :  { %40 = vst.msk [vmem:[#allocation0] sm:$0x1] %vm39_vm6, %v38_v9  }
  0x84   :  { %v44_v14 = vpop.permute.xlu0 %43  }
  0x85   :  { %46 = vst.msk [vmem:[#allocation0] sm:$0x1] %vm45_vm7, %v44_v14  }
  0x8c   :  { %v49_v15 = vld [vmem:[#allocation0] sm:$0x1] }
  0x8d   :  { %52 = vst [vmem:[%s112_s1] sm:$0x1] %v49_v15 }

// kernel: box2d_dist_fun.1
= control target key start
LH: loop header
LB: loop body
LE: loop exit
PB: predicated region body
PF: predicated region fallthrough
CT: control target
= control target key end

     0   :  { %s693_s21 = smov 0   ;;  %s695_s22 = smov 0   ;;  %s810_s0 = inlined_call_operand.vmem [shape: f32[2,16,2], index: 0, kind: input, shape index: {}]   ;;  %s811_s1 = inlined_call_operand.vmem [shape: f32[2,4,8], index: 1, kind: input, shape index: {}]   ;;  %s812_s2 = inlined_call_operand.vmem [shape: f32[24,128], index: 2, kind: input, shape index: {}]   ;;  %s813_s3 = inlined_call_operand.vmem [shape: f32[1,128], index: 3, kind: input, shape index: {}]   ;;  %s814_s4 = inlined_call_operand.vmem [shape: f32[128,128], index: 4, kind: input, shape index: {}]   ;;  %s815_s5 = inlined_call_operand.vmem [shape: f32[1,128], index: 5, kind: input, shape index: {}]   ;;  %s816_s6 = inlined_call_operand.vmem [shape: f32[2,16,128], index: 6, kind: output, shape index: {}]  }
   0x1   :  { %s697_s23 = smov 0  }
   0x2 LB: > { %s28_s24 = sadd.s32 1, %s647_s22  ;;  %p564_p0 = scmp.ge.s32.totalorder %s651_s23, 1  ;;  %s651_s23 = sphi %s697_s23, %s16_s23   ;;  %s647_s22 = sphi %s695_s22, %s818_s22   ;;  %s643_s21 = sphi %s693_s21, %s817_s21  }
   0x3   : > { %p30_p1 = scmp.ge.s32.totalorder %s28_s24, 2  ;;  %p242_p2 = scmp.lt.s32.totalorder %s651_s23, 3 }
   0x5   : > { %s820_s24 = smov (%p30_p1, %s28_s24), 0  ;;  %p243_p3 = pnand %p564_p0, %p242_p2 }
   0x6   : > { %p285_p4 = scmp.lt.s32.totalorder (!%p243_p3), %s643_s21, 1  ;;  %s655_s9 = smov (!%p243_p3), 8  }
   0x7   : > { %246 = sbr.rel (%p243_p3) target bundleno = 526 (0x20e), region = 44  ;;  %s657_s10 = smov (!%p243_p3), 16  }
   0xc   : > { %v653_v0 = vmov 0   ;;  %s822_s21 = smov (!%p285_p4, %s643_s21), 1  ;;  %v654_v3 = vmov 1   ;;  %v656_v24 = vmov 0.0   ;;  %v313_v28 = vld [vmem:[%s812_s2 + $0x10] sm:$0xff]  ;;  %v312_v29 = vld [vmem:[%s812_s2 + $0x8] sm:$0xff] }
   0xd   : > { %625 = vset.pattern.permute.xlu1 %v653_v0  ;;  %623 = vset.pattern.permute.xlu0 %v653_v0  ;;  %s576_s25 = sshll.u32 %s822_s21, 4  ;;  %s567_s29 = sshll.u32 %s822_s21, 2  ;;  %v311_v30 = vld [vmem:[%s812_s2] sm:$0xff]  ;;  %v330_v31 = vld [vmem:[%s814_s4 + $0x78] sm:$0xff]  ;;  %v329_v32 = vld [vmem:[%s814_s4 + $0x70] sm:$0xff]  ;;  %vm392_vm6 = vcmask 64512  }
   0xe   : > { %s292_s28 = scalar_lea.vmem %s810_s0, %s576_s25  ;;  %s297_s8 = scalar_lea.vmem %s811_s1, %s567_s29  ;;  %421 = vmatpush.msra.mxu0 %v313_v28  ;;  %436 = vmatpush.msra.mxu1 %v330_v31  ;;  %v328_v33 = vld [vmem:[%s814_s4 + $0x68] sm:$0xff]  ;;  %v327_v34 = vld [vmem:[%s814_s4 + $0x60] sm:$0xff]  ;;  %v326_v36 = vld [vmem:[%s814_s4 + $0x58] sm:$0xff]  ;;  %vm395_vm7 = vcmask 130048   ;;  %vm401_vm8 = vcmask 195584  }
   0xf   : > { %v309_v1 = vld [vmem:[%s292_s28 + $0x8] sm:$0xff]  ;;  %v308_v2 = vld [vmem:[%s292_s28] sm:$0xff]  ;;  %578 = vmatpush.msra.mxu2 %v330_v31  ;;  %v325_v37 = vld [vmem:[%s814_s4 + $0x50] sm:$0xff]  ;;  %s306_s17 = scalar_lea.vmem %s816_s6, %s576_s25 }
  0x10   : > { %339 = vperm.xlu1 %625, %v309_v1   ;;  %334 = vperm.xlu0 %623, %v308_v2   ;;  %v310_v4 = vld [vmem:[%s297_s8] sm:$0xf]  ;;  %v324_v38 = vld [vmem:[%s814_s4 + $0x48] sm:$0xff]  ;;  %v322_v43 = vld [vmem:[%s814_s4 + $0x38] sm:$0xff] }
  0x11   : > { %v342_v7 = vperm.slane %v310_v4, 0  ;;  %v345_v9 = vperm.slane %v310_v4, 2  ;;  %v356_v10 = vperm.slane %v310_v4, 1  ;;  %v359_v12 = vperm.slane %v310_v4, 3  ;;  %422 = vmatpush.msra.mxu0 %v312_v29  ;;  %437 = vmatpush.msra.mxu1 %v329_v32  ;;  %v323_v39 = vld [vmem:[%s814_s4 + $0x40] sm:$0xff]  ;;  %v321_v44 = vld [vmem:[%s814_s4 + $0x30] sm:$0xff] }
  0x12   : > { %579 = vmatpush.msra.mxu2 %v329_v32  ;;  %v320_v45 = vld [vmem:[%s814_s4 + $0x28] sm:$0xff]  ;;  %v319_v46 = vld [vmem:[%s814_s4 + $0x20] sm:$0xff]  ;;  %v318_v47 = vld [vmem:[%s814_s4 + $0x18] sm:$0xff] }
  0x13   : > { %423 = vmatpush.msra.mxu0 %v311_v30  ;;  %438 = vmatpush.msra.mxu1 %v328_v33  ;;  %v317_v52 = vld [vmem:[%s814_s4 + $0x10] sm:$0xff]  ;;  %v316_v53 = vld [vmem:[%s814_s4 + $0x8] sm:$0xff]  ;;  %v315_v54 = vld [vmem:[%s814_s4] sm:$0xff] }
  0x14   : > { %580 = vmatpush.msra.mxu2 %v328_v33  ;;  %v627_v55 = vld [vmem:[%s813_s3] ss:$0 sm:$0xff] }
  0x15   : > { %439 = vmatpush.msra.mxu1 %v327_v34  ;;  %v628_v62 = vld [vmem:[%s815_s5] ss:$0 sm:$0xff] }
  0x16   : > { %581 = vmatpush.msra.mxu2 %v327_v34 }
  0x17   : > { %440 = vmatpush.msra.mxu1 %v326_v36 }
  0x18   : > { %626 = vset.pattern.permute.xlu1 %v654_v3  ;;  %624 = vset.pattern.permute.xlu0 %v654_v3 }
  0x19   : > { %353 = vperm.xlu1 %626, %v309_v1   ;;  %349 = vperm.xlu0 %624, %v308_v2  }
  0x1a   : > { %582 = vmatpush.msra.mxu2 %v326_v36  ;;  %441 = vmatpush.msra.mxu1 %v325_v37 }
  0x1c   : > { %583 = vmatpush.msra.mxu2 %v325_v37  ;;  %442 = vmatpush.msra.mxu1 %v324_v38 }
  0x1e   : > { %584 = vmatpush.msra.mxu2 %v324_v38  ;;  %443 = vmatpush.msra.mxu1 %v323_v39 }
  0x20   : > { %585 = vmatpush.msra.mxu2 %v323_v39  ;;  %444 = vmatpush.msra.mxu1 %v322_v43 }
  0x22   : > { %586 = vmatpush.msra.mxu2 %v322_v43  ;;  %445 = vmatpush.msra.mxu1 %v321_v44 }
  0x24   : > { %587 = vmatpush.msra.mxu2 %v321_v44  ;;  %446 = vmatpush.msra.mxu1 %v320_v45 }
  0x26   : > { %588 = vmatpush.msra.mxu2 %v320_v45  ;;  %447 = vmatpush.msra.mxu1 %v319_v46 }
  0x28   : > { %589 = vmatpush.msra.mxu2 %v319_v46  ;;  %448 = vmatpush.msra.mxu1 %v318_v47 }
  0x2a   : > { %590 = vmatpush.msra.mxu2 %v318_v47  ;;  %449 = vmatpush.msra.mxu1 %v317_v52 }
  0x2c   : > { %591 = vmatpush.msra.mxu2 %v317_v52  ;;  %450 = vmatpush.msra.mxu1 %v316_v53 }
  0x2e   : > { %592 = vmatpush.msra.mxu2 %v316_v53  ;;  %451 = vmatpush.msra.mxu1 %v315_v54 }
  0x30   : > { %593 = vmatpush.msra.mxu2 %v315_v54 }
  0x82   : > { %v340_v5 = vpop.permute.xlu1 %339  ;;  %v335_v6 = vpop.permute.xlu0 %334 }
  0x83   : > { %v343_v8 = vsub.f32 %v335_v6, %v342_v7  ;;  %v344_v20 = vsub.f32 %v340_v5, %v342_v7 }
  0x85   : > { %v346_v11 = vmul.f32 %v345_v9, %v343_v8  ;;  %v723_v22 = vmul.f32 %v345_v9, %v344_v20 }
  0x87   : > { %v362_v17 = vand.u32 2147483647, %v346_v11  ;;  %v363_v26 = vand.u32 2147483647, %v723_v22 }
  0x89   : > { %vm364_vm0 = vcmp.le.f32.partialorder %v362_v17, 0.5  ;;  %vm365_vm4 = vcmp.le.f32.partialorder %v363_v26, 0.5 }
  0x8b   : > { %v354_v13 = vpop.permute.xlu1 %353  ;;  %v350_v14 = vpop.permute.xlu0 %349 }
  0x8c   : > { %v358_v15 = vsub.f32 %v354_v13, %v356_v10  ;;  %v357_v16 = vsub.f32 %v350_v14, %v356_v10 }
  0x8e   : > { %v361_v18 = vmul.f32 %v359_v12, %v358_v15  ;;  %v360_v19 = vmul.f32 %v359_v12, %v357_v16 }
  0x90   : > { %380 = vrot.lane.b32.xlu1 %v361_v18, %s655_s9  ;;  %378 = vrot.lane.b32.xlu2 %v360_v19, %s655_s9  ;;  %v366_v21 = vand.u32 2147483647, %v360_v19  ;;  %v367_v23 = vand.u32 2147483647, %v361_v18 }
  0x92   : > { %vm368_vm1 = vcmp.le.f32.partialorder %v366_v21, 0.5  ;;  %vm369_vm3 = vcmp.le.f32.partialorder %v367_v23, 0.5 }
  0x93   : > { %vm370_vm2 = vmand %vm364_vm0, %vm368_vm1 }
  0x94   : > { %v570_v25 = vsel %vm370_vm2, 1.0, %v656_v24  ;;  %vm371_vm5 = vmand %vm365_vm4, %vm369_vm3 }
  0x95   : > { %v571_v27 = vsel %vm371_vm5, 1.0, %v656_v24 }
  0x98   : > { %386 = vrot.lane.b32.xlu2 %v570_v25, %s657_s10 }
  0xa0   : > { %388 = vrot.lane.b32.xlu2 %v571_v27, %s657_s10 }
  0xea   : > { %v379_v35 = vpop.permute.xlu2 %378 }
  0xeb   : > { %v393_v40 = vsel %vm392_vm6, %v346_v11, %v379_v35 }
  0xf2   : > { %v387_v41 = vpop.permute.xlu2 %386 }
  0xf3   : > { %v396_v42 = vsel %vm395_vm7, %v393_v40, %v387_v41 }
  0xf4   : > { %572 = vmatmul.msk.f32.vlgmr.msra.gmra.mxu0 %vm401_vm8, %v396_v42 }
  0xfa   : > { %v389_v49 = vpop.permute.xlu2 %388 }
 0x102   : > { %v381_v48 = vpop.permute.xlu1 %380 }
 0x103   : > { %v394_v50 = vsel %vm392_vm6, %v723_v22, %v381_v48 }
 0x104   : > { %v397_v51 = vsel %vm395_vm7, %v394_v50, %v389_v49 }
 0x105   : > { %573 = vmatmul.msk.f32.gmra.mxu0 %vm401_vm8, %v397_v51 }
 0x171   : > { %v425_v56 = vpop.f32.mrf.mxu0 }
 0x172   : > { %v426_v57 = vadd.f32 %v627_v55, %v425_v56 }
 0x174   : > { %v431_v58 = vmax.f32 %v426_v57, 0.0 }
 0x176   : > { %452 = vmatmul.f32.vlgmr.msra.gmra.mxu1 %v431_v58 }
 0x182   : > { %v428_v59 = vpop.f32.mrf.mxu0 }
 0x183   : > { %v429_v60 = vadd.f32 %v627_v55, %v428_v59 }
 0x185   : > { %v432_v61 = vmax.f32 %v429_v60, 0.0 }
 0x187   : > { %455 = vmatmul.f32.vlgmr.msra.gmra.mxu2 %v432_v61 }
 0x1f3   : > { %v453_v63 = vpop.f32.mrf.mxu1 }
 0x1f4   : > { %v454_v0 = vadd.f32 %v628_v62, %v453_v63 }
 0x1f6   : > { %459 = vst [vmem:[%s306_s17] sm:$0xff] %v454_v0 }
 0x20a   : > { %v456_v1 = vpop.f32.mrf.mxu2 }
 0x20b   : > { %v457_v2 = vadd.f32 %v628_v62, %v456_v1 }
 0x20d   : > { %460 = vst [vmem:[%s306_s17 + $0x8] sm:$0xff] %v457_v2 }
 0x20e PF: > { %s16_s23 = sadd.s32 1, %s651_s23   ;;  %s817_s21 = smov %s647_s22 }
 0x20f   : > { %p13_p5 = scmp.ge.s32.totalorder %s16_s23, 4   ;;  %s818_s22 = smov %s820_s24 }
 0x211   :  { %15 = sbr.rel (!%p13_p5) target bundleno = 2 (0x2), region = 77 }

</bundles_post_ra>
